<compile_context>
chip_gen: v6e
topology: v6e:2x2x1
jax: 0.10.0
libtpu: 0.0.40
codegen_flags: <defaults>
</compile_context>

<pallas_src>
import functools
import math

import jax
import jax.numpy as jnp
import numpy as np
from jax.experimental import pallas as pl
from jax.experimental.pallas import tpu as pltpu


def _round_up(a, b):
    return (a + b - 1) // b * b


# --------------------------------------------------------------------------
# Pallas kernel: one (batch, row-band) step of Conv2d(k, pad=k//2)+bias+ReLU
# --------------------------------------------------------------------------
def _dblock_conv_kernel(x_ref, w_ref, b_ref, o_ref, *, k, wp, lf, kp, cin_p):
    # x_ref : (cin_p, (th+2p+1)*wp)  bf16  halo'd row band, spatially flattened
    # w_ref : (coutp, kp)            bf16  fused-tap weight matrix
    # b_ref : (coutp, 1)             f32
    # o_ref : (coutp, lf)            f32   lf = th*wp (channel-major, lane-dense)
    band = x_ref[...]                                    # one aligned load

    # Fused im2col: every tap is a static lane-offset view of the band.
    # (Columns j' >= W of each output row are junk and sliced off in the
    #  wrapper; the +1 junk row in the band keeps every slice in-bounds.)
    taps = [band[:, kh * wp + kw: kh * wp + kw + lf]
            for kh in range(k) for kw in range(k)]       # k*k of (cin_p, lf)
    kk = k * k * cin_p
    if kp > kk:                                          # zero-pad K to 128-multiple
        taps.append(jnp.zeros((kp - kk, lf), dtype=band.dtype))
    patches = jnp.concatenate(taps, axis=0)              # (kp, lf), 16-aligned offsets

    # Single MXU dot with full contraction depth, f32 accumulation.
    acc = jnp.dot(w_ref[...], patches, preferred_element_type=jnp.float32)
    o_ref[...] = jnp.maximum(acc + b_ref[...], 0.0).astype(o_ref.dtype)


# --------------------------------------------------------------------------
# Wrapper
# --------------------------------------------------------------------------
def dkernel_forward(x, dense_x, weight, bias, kernel, *, max_lanes=16384):
    """DKernel forward.

    x       : [N, C0, H, W]     (NCHW, float32)
    dense_x : list of [N, Ci, H, W]
    weight  : [Cout, Cin, k, k] (PyTorch Conv2d layout), Cin = C0 + sum(Ci)
    bias    : [Cout]
    """
    # lf_cat([x, *dense_x], dim=1): plain NCHW channel concat (no transposes).
    xin = jnp.concatenate([x] + list(dense_x), axis=1)
    n, cin, h, w = xin.shape
    cout = weight.shape[0]
    k = kernel
    p = k // 2
    wp = w + 2 * p                                   # padded row width

    # --- tile selection: collapse h for small images, else 128-lane-granule bands
    lane_g = 128 // math.gcd(wp, 128)                # smallest th with (th*wp)%128==0
    if h * wp <= max_lanes:
        th = h                                       # whole image per grid step
    else:
        th = max(lane_g, (max_lanes // wp) // lane_g * lane_g)
    hb = -(-h // th)
    hpad = hb * th                                   # tail rows (if any) sliced off
    lf = th * wp                                     # flattened lanes per step

    # --- padding granules
    cin_p = _round_up(cin, 16)                       # bf16 sublane-pack granule
    coutp = _round_up(cout, 8)                       # sublane granule only (no 128 pad)
    kk = k * k * cin_p
    kp = _round_up(kk, 128)                          # fused contraction depth

    # --- channel pad + spatial halo pad (+1 junk bottom row) + bf16 cast,
    #     one fused XLA pass; no NCHW<->NHWC transposes anywhere.
    band_rows = th + 2 * p + 1
    hp_tot = hpad + 2 * p + 1
    xpad = jnp.pad(xin, ((0, 0), (0, cin_p - cin),
                         (p, hpad - h + p + 1), (p, p))).astype(jnp.bfloat16)
    lband = band_rows * wp
    if hb == 1:
        xbands = xpad.reshape(n, 1, cin_p, lband)    # free reshape, no duplication
    else:
        r = (jnp.arange(hb) * th)[:, None] + jnp.arange(band_rows)[None, :]
        xb = xpad[:, :, r, :]                        # (n, cin_p, hb, band_rows, wp)
        xbands = jnp.transpose(xb, (0, 2, 1, 3, 4)).reshape(n, hb, cin_p, lband)

    # --- weights: OIHW -> (coutp, kp) with patch-row order (kh, kw, c)
    w2 = jnp.transpose(weight, (2, 3, 1, 0))                       # (k, k, cin, cout)
    w2 = jnp.pad(w2, ((0, 0), (0, 0), (0, cin_p - cin), (0, coutp - cout)))
    w_mat = jnp.pad(w2.reshape(kk, coutp).T,
                    ((0, 0), (0, kp - kk))).astype(jnp.bfloat16)   # (coutp, kp)
    b_col = jnp.pad(bias, (0, coutp - cout)).reshape(coutp, 1).astype(jnp.float32)

    kern = functools.partial(_dblock_conv_kernel, k=k, wp=wp, lf=lf, kp=kp,
                             cin_p=cin_p)

    # --- VMEM budget: band block + weights + 2x output tile + patch slab (+views)
    in_block = cin_p * lband * 2
    out_block = coutp * lf * 4
    vmem_est = (2 * in_block + 2 * out_block + int(w_mat.size) * 2
                + kp * lf * 2 + 10 * cin_p * lf * 2)
    vmem_limit = int(min(64 << 20, max(32 << 20, 2 * vmem_est)))

    flops = 2 * n * hb * lf * kp * coutp
    bytes_accessed = (int(xbands.size) * 2 + int(w_mat.size) * 2
                      + int(b_col.size) * 4 + n * coutp * hpad * wp * 4)

    out = pl.pallas_call(
        kern,
        out_shape=jax.ShapeDtypeStruct((n, coutp, hpad * wp), jnp.float32),
        grid_spec=pltpu.PrefetchScalarGridSpec(
            num_scalar_prefetch=0,
            grid=(n, hb),
            in_specs=[
                # halo'd row-band block per (batch, h-band) step
                pl.BlockSpec((None, None, cin_p, lband), lambda i, j: (i, j, 0, 0)),
                pl.BlockSpec((coutp, kp), lambda i, j: (0, 0)),
                pl.BlockSpec((coutp, 1), lambda i, j: (0, 0)),
            ],
            out_specs=pl.BlockSpec((None, coutp, lf), lambda i, j: (i, 0, j)),
        ),
        compiler_params=pltpu.CompilerParams(
            dimension_semantics=("parallel", "parallel"),
            vmem_limit_bytes=vmem_limit,
        ),
        cost_estimate=pl.CostEstimate(
            flops=flops, transcendentals=0, bytes_accessed=bytes_accessed),
    )(xbands, w_mat, b_col)

    # Channel-major output -> NCHW by reshape + slice (no transpose).
    out = out.reshape(n, coutp, hpad, wp)[:, :cout, :h, :w]
    return out


# --------------------------------------------------------------------------
# Reference (pure JAX, f32) for correctness checking
# --------------------------------------------------------------------------
def dkernel_reference(x, dense_x, weight, bias, kernel):
    xin = jnp.concatenate([x, *dense_x], axis=1)
    p = kernel // 2
    y = jax.lax.conv_general_dilated(
        xin, weight, window_strides=(1, 1), padding=[(p, p), (p, p)],
        dimension_numbers=("NCHW", "OIHW", "NCHW"))
    y = y + bias.reshape(1, -1, 1, 1)
    return jnp.maximum(y, 0.0)


# --------------------------------------------------------------------------
if __name__ == "__main__":
    key = jax.random.PRNGKey(0)
    k_x, k_d0, k_d1, k_w, k_b = jax.random.split(key, 5)

    # Small shapes consistent with DKNet-style dense connections.
    N, H, W = 2, 16, 16
    c_x, c_d0, c_d1 = 4, 4, 4          # x plus two dense feature maps
    chns_in = c_x + c_d0 + c_d1        # 12
    chns_out = 8
    kernel = 3

    x = jax.random.normal(k_x, (N, c_x, H, W), dtype=jnp.float32)
    dense_x = [
        jax.random.normal(k_d0, (N, c_d0, H, W), dtype=jnp.float32),
        jax.random.normal(k_d1, (N, c_d1, H, W), dtype=jnp.float32),
    ]

    # Deterministic parameter init (Conv2d-like fan-in scaling).
    fan_in = chns_in * kernel * kernel
    weight = jax.random.normal(
        k_w, (chns_out, chns_in, kernel, kernel), dtype=jnp.float32
    ) * (1.0 / np.sqrt(fan_in))
    bias = jax.random.normal(k_b, (chns_out,), dtype=jnp.float32) * 0.01

    fwd = jax.jit(functools.partial(dkernel_forward, kernel=kernel))
    out = jax.block_until_ready(fwd(x, dense_x, weight, bias))

    ref = dkernel_reference(x, dense_x, weight, bias, kernel)
    # bf16 matmul operands (f32 accumulation) -> loosened tolerance.
    np.testing.assert_allclose(np.asarray(out), np.asarray(ref),
                               rtol=2e-2, atol=2e-2)

    print("KERNEL_OK")
</pallas_src>

<mosaic_0001>
module attributes {stable_mosaic.version = 11 : i64} {
  func.func @_dblock_conv_kernel(%arg0: i32, %arg1: i32, %arg2: memref<1x1x16x342xbf16, #tpu.memory_space<vmem>>, %arg3: memref<8x256xbf16, #tpu.memory_space<vmem>>, %arg4: memref<8x1xf32, #tpu.memory_space<vmem>>, %arg5: memref<1x8x288xf32, #tpu.memory_space<vmem>>) attributes {dimension_semantics = [#tpu.dimension_semantics<parallel>, #tpu.dimension_semantics<parallel>], iteration_bounds = array<i64: 2, 1>, scalar_prefetch = 0 : i64, scratch_operands = 0 : i64, tpu.core_type = #tpu.core_type<tc>, window_params = [{transform_indices = @transform_0, window_bounds = array<i64: 1, 1, 16, 342>}, {pipeline_mode = #tpu.pipeline_mode<synchronous>, transform_indices = @transform_1, window_bounds = array<i64: 8, 256>}, {pipeline_mode = #tpu.pipeline_mode<synchronous>, transform_indices = @transform_2, window_bounds = array<i64: 8, 1>}, {transform_indices = @transform_3, window_bounds = array<i64: 1, 8, 288>}]} {
    %c0 = arith.constant 0 : index
    %c0_0 = arith.constant 0 : index
    %c0_1 = arith.constant 0 : index
    %c0_2 = arith.constant 0 : index
    %0 = vector.load %arg2[%c0, %c0_0, %c0_1, %c0_2] : memref<1x1x16x342xbf16, #tpu.memory_space<vmem>>, vector<1x1x16x342xbf16>
    %1 = vector.shape_cast %0 : vector<1x1x16x342xbf16> to vector<16x342xbf16>
    %2 = vector.extract_strided_slice %1 {offsets = [0, 0], sizes = [16, 288], strides = [1, 1]} : vector<16x342xbf16> to vector<16x288xbf16>
    %3 = vector.extract_strided_slice %1 {offsets = [0, 1], sizes = [16, 288], strides = [1, 1]} : vector<16x342xbf16> to vector<16x288xbf16>
    %4 = vector.extract_strided_slice %1 {offsets = [0, 2], sizes = [16, 288], strides = [1, 1]} : vector<16x342xbf16> to vector<16x288xbf16>
    %5 = vector.extract_strided_slice %1 {offsets = [0, 18], sizes = [16, 288], strides = [1, 1]} : vector<16x342xbf16> to vector<16x288xbf16>
    %6 = vector.extract_strided_slice %1 {offsets = [0, 19], sizes = [16, 288], strides = [1, 1]} : vector<16x342xbf16> to vector<16x288xbf16>
    %7 = vector.extract_strided_slice %1 {offsets = [0, 20], sizes = [16, 288], strides = [1, 1]} : vector<16x342xbf16> to vector<16x288xbf16>
    %8 = vector.extract_strided_slice %1 {offsets = [0, 36], sizes = [16, 288], strides = [1, 1]} : vector<16x342xbf16> to vector<16x288xbf16>
    %9 = vector.extract_strided_slice %1 {offsets = [0, 37], sizes = [16, 288], strides = [1, 1]} : vector<16x342xbf16> to vector<16x288xbf16>
    %10 = vector.extract_strided_slice %1 {offsets = [0, 38], sizes = [16, 288], strides = [1, 1]} : vector<16x342xbf16> to vector<16x288xbf16>
    %cst = arith.constant 0.000000e+00 : bf16
    %11 = vector.broadcast %cst : bf16 to vector<112x288xbf16>
    %12 = tpu.concatenate %2, %3, %4, %5, %6, %7, %8, %9, %10, %11 in 0 : vector<16x288xbf16>, vector<16x288xbf16>, vector<16x288xbf16>, vector<16x288xbf16>, vector<16x288xbf16>, vector<16x288xbf16>, vector<16x288xbf16>, vector<16x288xbf16>, vector<16x288xbf16>, vector<112x288xbf16> -> vector<256x288xbf16>
    %c0_3 = arith.constant 0 : index
    %c0_4 = arith.constant 0 : index
    %13 = vector.load %arg3[%c0_3, %c0_4] : memref<8x256xbf16, #tpu.memory_space<vmem>>, vector<8x256xbf16>
    %cst_5 = arith.constant dense<0.000000e+00> : vector<8x288xf32>
    %14 = tpu.matmul %13, %12, %cst_5 {dimension_numbers = #tpu.dot_dimension_numbers<[1], [0], [0], [1], [0, 0, 1, 1], [], []>} : vector<8x256xbf16>, vector<256x288xbf16>, vector<8x288xf32> -> vector<8x288xf32>
    %c0_6 = arith.constant 0 : index
    %c0_7 = arith.constant 0 : index
    %15 = vector.load %arg4[%c0_6, %c0_7] : memref<8x1xf32, #tpu.memory_space<vmem>>, vector<8x1xf32>
    %16 = vector.broadcast %15 : vector<8x1xf32> to vector<8x288xf32>
    %17 = arith.addf %14, %16 : vector<8x288xf32>
    %cst_8 = arith.constant 0.000000e+00 : f32
    %18 = vector.broadcast %cst_8 : f32 to vector<8x288xf32>
    %19 = arith.maximumf %17, %18 : vector<8x288xf32>
    %c0_9 = arith.constant 0 : index
    %c0_10 = arith.constant 0 : index
    %c0_11 = arith.constant 0 : index
    %20 = vector.load %arg5[%c0_9, %c0_10, %c0_11] : memref<1x8x288xf32, #tpu.memory_space<vmem>>, vector<1x8x288xf32>
    %21 = vector.shape_cast %20 : vector<1x8x288xf32> to vector<8x288xf32>
    %22 = vector.shape_cast %19 : vector<8x288xf32> to vector<1x8x288xf32>
    tpu.vector_store %arg5[%c0_9, %c0_10, %c0_11], %22 {strides = array<i32>} : memref<1x8x288xf32, #tpu.memory_space<vmem>>, vector<1x8x288xf32>,
    return
  }
  func.func @transform_0(%arg0: i32, %arg1: i32) -> (i32, i32, i32, i32) {
    %c0_i32 = arith.constant 0 : i32
    %c0_i32_0 = arith.constant 0 : i32
    %c0_i32_1 = arith.constant 0 : i32
    return %arg0, %arg1, %c0_i32, %c0_i32_0 : i32, i32, i32, i32
  }
  func.func @transform_1(%arg0: i32, %arg1: i32) -> (i32, i32) {
    %c0_i32 = arith.constant 0 : i32
    %c0_i32_0 = arith.constant 0 : i32
    %c0_i32_1 = arith.constant 0 : i32
    return %c0_i32, %c0_i32_0 : i32, i32
  }
  func.func @transform_2(%arg0: i32, %arg1: i32) -> (i32, i32) {
    %c0_i32 = arith.constant 0 : i32
    %c0_i32_0 = arith.constant 0 : i32
    %c0_i32_1 = arith.constant 0 : i32
    return %c0_i32, %c0_i32_0 : i32, i32
  }
  func.func @transform_3(%arg0: i32, %arg1: i32) -> (i32, i32, i32) {
    %c0_i32 = arith.constant 0 : i32
    %c0_i32_0 = arith.constant 0 : i32
    return %arg0, %c0_i32, %arg1 : i32, i32, i32
  }
}

</mosaic_0001>

<bundles_post_ra>
// kernel: dkernel_forward.1
= control target key start
LH: loop header
LB: loop body
LE: loop exit
PB: predicated region body
PF: predicated region fallthrough
CT: control target
= control target key end

     0   :  { %s625_s12 = smov 0   ;;  %s627_s13 = smov 0   ;;  %s720_s0 = inlined_call_operand.vmem [shape: bf16[2,1,16,342], index: 0, kind: input, shape index: {}]   ;;  %s721_s1 = inlined_call_operand.vmem [shape: bf16[8,256], index: 1, kind: input, shape index: {}]   ;;  %s722_s2 = inlined_call_operand.vmem [shape: f32[8,1], index: 2, kind: input, shape index: {}]   ;;  %s723_s3 = inlined_call_operand.vmem [shape: f32[2,8,288], index: 3, kind: output, shape index: {}]  }
   0x1   :  { %s629_s14 = smov 0  }
   0x2 LB: > { %s25_s15 = sadd.s32 1, %s590_s13  ;;  %p521_p0 = scmp.ge.s32.totalorder %s594_s14, 1  ;;  %s594_s14 = sphi %s629_s14, %s13_s14   ;;  %s590_s13 = sphi %s627_s13, %s725_s13   ;;  %s586_s12 = sphi %s625_s12, %s724_s12  }
   0x3   : > { %p27_p1 = scmp.ge.s32.totalorder %s25_s15, 2  ;;  %p157_p2 = scmp.lt.s32.totalorder %s594_s14, 3 }
   0x5   : > { %s727_s15 = smov (%p27_p1, %s25_s15), 0  ;;  %p158_p3 = pnand %p521_p0, %p157_p2 }
   0x6   : > { %p189_p4 = scmp.lt.s32.totalorder (!%p158_p3), %s586_s12, 1  ;;  %s597_s20 = smov (!%p158_p3), 91  }
   0x7   : > { %161 = sbr.rel (%p158_p3) target bundleno = 384 (0x180), region = 32  ;;  %s598_s21 = smov (!%p158_p3), 92  }
   0x8   : > { %s599_s22 = smov (!%p158_p3), 108   ;;  %s600_s23 = smov (!%p158_p3), 109  }
   0x9   : > { %s601_s24 = smov (!%p158_p3), 110   ;;  %s602_s25 = smov (!%p158_p3), 126  }
   0xa   : > { %s603_s28 = smov (!%p158_p3), 127   ;;  %s604_s29 = smov (!%p158_p3), 90  }
   0xc   : > { %v596_v0 = vmov 0   ;;  %s729_s12 = smov (!%p189_p4, %s586_s12), 1  ;;  %v678_v4 = vld [vmem:[%s721_s1] sm:$0xff]  ;;  %vm307_vm0 = vcmask 744448   ;;  %vm295_vm1 = vcmask 752640   ;;  %vm283_vm2 = vcmask 883712  }
   0xd   : > { %380 = vmatprep.subr.bf16.mxu1 %v596_v0  ;;  %565 = vset.pattern.permute.xlu0 %v596_v0  ;;  %s531_s16 = smul.u32 24, %s729_s12  ;;  %v528_v5 = vcombine.high %v678_v4, %v678_v4  ;;  %v326_v6 = vld [vmem:[%s722_s2] sm:$0xff]  ;;  %vm271_vm3 = vcmask 891904   ;;  %vm259_vm4 = vcmask 900096   ;;  %vm247_vm5 = vcmask 1031168  }
   0xe   : > { %vm235_vm6 = vcmask 1039360   ;;  %vm319_vm7 = vcmask 736256   ;;  %v527_v45 = vcombine.low %v678_v4, %v678_v4  ;;  %vm425_vm8 = vcmask 261120  }
   0xf   : > { %s197_s19 = scalar_lea.vmem %s720_s0, %s531_s16  ;;  %412 = vmatprep.mubr.bf16.mxu1 %v528_v5  ;;  %371 = vmatprep.mubr.bf16.mxu0 %v528_v5  ;;  %s206_s7 = scalar_lea.vmem %s723_s3, %s531_s16 }
  0x10   : > { %v653_v1 = vld [vmem:[%s197_s19 + $0x4] ss:$12 sps:$4 sm:$0xff]   ;;  %v655_v2 = vld [vmem:[%s197_s19] ss:$12 sps:$4 sm:$0xff]   ;;  %v658_v3 = vld [vmem:[%s197_s19 + $0x8] ss:$12 sps:$4 sm:$0xff]  }
  0x11   : > { %303 = vrot.lane.b32.xlu0 %v653_v1, %s597_s20  ;;  %301 = vrot.lane.b32.xlu1 %v655_v2, %s597_s20 }
  0x15   : > { %305 = vrot.lane.b32.xlu0 %v658_v3, %s597_s20  ;;  %291 = vrot.lane.b32.xlu1 %v653_v1, %s598_s21 }
  0x19   : > { %293 = vrot.lane.b32.xlu0 %v658_v3, %s598_s21  ;;  %289 = vrot.lane.b32.xlu1 %v655_v2, %s598_s21 }
  0x1d   : > { %279 = vrot.lane.b32.xlu0 %v653_v1, %s599_s22  ;;  %281 = vrot.lane.b32.xlu1 %v658_v3, %s599_s22 }
  0x21   : > { %277 = vrot.lane.b32.xlu0 %v655_v2, %s599_s22  ;;  %267 = vrot.lane.b32.xlu1 %v653_v1, %s600_s23 }
  0x25   : > { %269 = vrot.lane.b32.xlu0 %v658_v3, %s600_s23  ;;  %265 = vrot.lane.b32.xlu1 %v655_v2, %s600_s23 }
  0x29   : > { %255 = vrot.lane.b32.xlu0 %v653_v1, %s601_s24  ;;  %257 = vrot.lane.b32.xlu1 %v658_v3, %s601_s24 }
  0x2d   : > { %253 = vrot.lane.b32.xlu0 %v655_v2, %s601_s24  ;;  %243 = vrot.lane.b32.xlu1 %v653_v1, %s602_s25 }
  0x31   : > { %245 = vrot.lane.b32.xlu0 %v658_v3, %s602_s25  ;;  %241 = vrot.lane.b32.xlu1 %v655_v2, %s602_s25 }
  0x35   : > { %231 = vrot.lane.b32.xlu0 %v653_v1, %s603_s28  ;;  %233 = vrot.lane.b32.xlu1 %v658_v3, %s603_s28 }
  0x39   : > { %229 = vrot.lane.b32.xlu0 %v655_v2, %s603_s28  ;;  %315 = vrot.lane.b32.xlu1 %v653_v1, %s604_s29 }
  0x3d   : > { %317 = vrot.lane.b32.xlu0 %v658_v3, %s604_s29  ;;  %313 = vrot.lane.b32.xlu1 %v655_v2, %s604_s29 }
  0x41   : > { %329 = vperm.xlu0 %565, %v326_v6  }
  0x83   : > { %v304_v7 = vpop.permute.xlu0 %303  ;;  %v302_v8 = vpop.permute.xlu1 %301 }
  0x84   : > { %v308_v12 = vsel %vm307_vm0, %v302_v8, %v304_v7 }
  0x87   : > { %v306_v9 = vpop.permute.xlu0 %305  ;;  %v292_v10 = vpop.permute.xlu1 %291 }
  0x88   : > { %381 = vmatpush1.bf16.msra.mxu1 %v306_v9  ;;  %v309_v11 = vsel %vm307_vm0, %v304_v7, %v306_v9 }
  0x89   : > { %339 = vmatprep.subr.bf16.mxu0 %v309_v11  ;;  %382 = vmatprep.subr.bf16.mxu1 %v596_v0 }
  0x8a   : > { %340 = vmatpush1.bf16.msra.mxu0 %v308_v12 }
  0x8b   : > { %v294_v13 = vpop.permute.xlu0 %293  ;;  %v290_v14 = vpop.permute.xlu1 %289 }
  0x8c   : > { %383 = vmatpush1.bf16.msra.mxu1 %v294_v13  ;;  %v297_v15 = vsel %vm295_vm1, %v292_v10, %v294_v13  ;;  %v296_v16 = vsel %vm295_vm1, %v290_v14, %v292_v10 }
  0x8d   : > { %341 = vmatprep.subr.bf16.mxu0 %v297_v15  ;;  %384 = vmatprep.subr.bf16.mxu1 %v596_v0 }
  0x8e   : > { %342 = vmatpush1.bf16.msra.mxu0 %v296_v16 }
  0x8f   : > { %v280_v17 = vpop.permute.xlu0 %279  ;;  %v282_v18 = vpop.permute.xlu1 %281 }
  0x90   : > { %v285_v19 = vsel %vm283_vm2, %v280_v17, %v282_v18  ;;  %385 = vmatpush1.bf16.msra.mxu1 %v282_v18 }
  0x91   : > { %343 = vmatprep.subr.bf16.mxu0 %v285_v19  ;;  %386 = vmatprep.subr.bf16.mxu1 %v596_v0 }
  0x93   : > { %v278_v20 = vpop.permute.xlu0 %277  ;;  %v268_v21 = vpop.permute.xlu1 %267 }
  0x94   : > { %v284_v22 = vsel %vm283_vm2, %v278_v20, %v280_v17 }
  0x95   : > { %344 = vmatpush1.bf16.msra.mxu0 %v284_v22 }
  0x97   : > { %v270_v23 = vpop.permute.xlu0 %269  ;;  %v266_v24 = vpop.permute.xlu1 %265 }
  0x98   : > { %387 = vmatpush1.bf16.msra.mxu1 %v270_v23  ;;  %v273_v25 = vsel %vm271_vm3, %v268_v21, %v270_v23  ;;  %v272_v26 = vsel %vm271_vm3, %v266_v24, %v268_v21 }
  0x99   : > { %345 = vmatprep.subr.bf16.mxu0 %v273_v25  ;;  %388 = vmatprep.subr.bf16.mxu1 %v596_v0 }
  0x9a   : > { %346 = vmatpush1.bf16.msra.mxu0 %v272_v26 }
  0x9b   : > { %v256_v27 = vpop.permute.xlu0 %255  ;;  %v258_v28 = vpop.permute.xlu1 %257 }
  0x9c   : > { %v261_v29 = vsel %vm259_vm4, %v256_v27, %v258_v28  ;;  %389 = vmatpush1.bf16.msra.mxu1 %v258_v28 }
  0x9d   : > { %347 = vmatprep.subr.bf16.mxu0 %v261_v29  ;;  %390 = vmatprep.subr.bf16.mxu1 %v596_v0 }
  0x9f   : > { %v254_v30 = vpop.permute.xlu0 %253  ;;  %v244_v31 = vpop.permute.xlu1 %243 }
  0xa0   : > { %v260_v32 = vsel %vm259_vm4, %v254_v30, %v256_v27 }
  0xa1   : > { %348 = vmatpush1.bf16.msra.mxu0 %v260_v32 }
  0xa3   : > { %v246_v33 = vpop.permute.xlu0 %245  ;;  %v242_v34 = vpop.permute.xlu1 %241 }
  0xa4   : > { %391 = vmatpush1.bf16.msra.mxu1 %v246_v33  ;;  %v249_v35 = vsel %vm247_vm5, %v244_v31, %v246_v33  ;;  %v248_v36 = vsel %vm247_vm5, %v242_v34, %v244_v31 }
  0xa5   : > { %349 = vmatprep.subr.bf16.mxu0 %v249_v35  ;;  %392 = vmatprep.subr.bf16.mxu1 %v596_v0 }
  0xa6   : > { %350 = vmatpush1.bf16.msra.mxu0 %v248_v36 }
  0xa7   : > { %v232_v37 = vpop.permute.xlu0 %231  ;;  %v234_v38 = vpop.permute.xlu1 %233 }
  0xa8   : > { %393 = vmatpush1.bf16.msra.mxu1 %v234_v38  ;;  %v237_v39 = vsel %vm235_vm6, %v232_v37, %v234_v38 }
  0xa9   : > { %351 = vmatprep.subr.bf16.mxu0 %v237_v39  ;;  %394 = vmatprep.subr.bf16.mxu1 %v596_v0 }
  0xab   : > { %v230_v40 = vpop.permute.xlu0 %229  ;;  %v316_v41 = vpop.permute.xlu1 %315 }
  0xac   : > { %v236_v42 = vsel %vm235_vm6, %v230_v40, %v232_v37  ;;  %395 = vmatpush1.bf16.msra.mxu1 %v658_v3 }
  0xad   : > { %352 = vmatpush1.bf16.msra.mxu0 %v236_v42  ;;  %410 = vmatprep.subr.bf16.mxu1 %v596_v0 }
  0xae   : > { %353 = vmatprep.subr.bf16.mxu0 %v653_v1 }
  0xaf   : > { %v318_v43 = vpop.permute.xlu0 %317  ;;  %v314_v46 = vpop.permute.xlu1 %313 }
  0xb0   : > { %v321_v44 = vsel %vm319_vm7, %v316_v41, %v318_v43  ;;  %411 = vmatpush2.bf16.msra.mxu1 %v318_v43  ;;  %v320_v47 = vsel %vm319_vm7, %v314_v46, %v316_v41 }
  0xb1   : > { %354 = vmatpush1.bf16.msra.mxu0 %v655_v2 }
  0xb2   : > { %369 = vmatprep.subr.bf16.mxu0 %v321_v44 }
  0xb3   : > { %413 = vmatmul.mubr.bf16.vlgmr.msra.gmra.mxu1 %v527_v45 }
  0xb5   : > { %370 = vmatpush2.bf16.msra.mxu0 %v320_v47 }
  0xb8   : > { %372 = vmatmul.mubr.bf16.vlgmr.msra.gmra.mxu0 %v527_v45 }
  0xbc   : > { %v330_v48 = vpop.permute.xlu0 %329 }
 0x173   : > { %v414_v49 = vpop.f32.mrf.mxu1 }
 0x174   : > { %v415_v50 = vadd.f32 %v414_v49, %v330_v48 }
 0x175   : > { %v416_v51 = vpop.f32.mrf.mxu1 }
 0x176   : > { %v422_v52 = vmax.f32 %v415_v50, 0.0 }
 0x177   : > { %v417_v53 = vpop.f32.mrf.mxu1 }
 0x178   : > { %v373_v54 = vpop.f32.mrf.mxu0  ;;  %426 = vst.msk [vmem:[%s206_s7 + $0x10] sm:$0xff] %vm425_vm8, %v422_v52 }
 0x179   : > { %v374_v55 = vadd.f32 %v373_v54, %v330_v48  ;;  %v418_v56 = vpop.f32.mrf.mxu1 }
 0x17a   : > { %v375_v57 = vpop.f32.mrf.mxu0 }
 0x17b   : > { %v420_v58 = vmax.f32 %v374_v55, 0.0  ;;  %v376_v59 = vadd.f32 %v375_v57, %v330_v48 }
 0x17c   : > { %v377_v60 = vpop.f32.mrf.mxu0 }
 0x17d   : > { %423 = vst [vmem:[%s206_s7] sm:$0xff] %v420_v58  ;;  %v421_v61 = vmax.f32 %v376_v59, 0.0 }
 0x17e   : > { %v378_v62 = vpop.f32.mrf.mxu0 }
 0x17f   : > { %424 = vst [vmem:[%s206_s7 + $0x8] sm:$0xff] %v421_v61 }
 0x180 PF: > { %s13_s14 = sadd.s32 1, %s594_s14   ;;  %s724_s12 = smov %s590_s13 }
 0x181   : > { %p10_p5 = scmp.ge.s32.totalorder %s13_s14, 4   ;;  %s725_s13 = smov %s727_s15 }
 0x183   :  { %12 = sbr.rel (!%p10_p5) target bundleno = 2 (0x2), region = 62 }

</bundles_post_ra>
